<compile_context>
chip_gen: v6e
topology: v6e:2x2x1
jax: 0.10.0
libtpu: 0.0.40
codegen_flags: <defaults>
</compile_context>

<pallas_src>
import functools

import jax
import jax.numpy as jnp
import numpy as np
from jax.experimental import pallas as pl
from jax.experimental.pallas import tpu as pltpu

BN_EPS = 1e-5


def _round_up(x, m):
    return (x + m - 1) // m * m


# ---------------------------------------------------------------------------
# Kernel 1: hoisted dense projections K/Q/V = x @ W? + b?  (one pass over nodes)
# ---------------------------------------------------------------------------
def _proj_kernel(x_ref, wk_ref, wq_ref, wv_ref, bk_ref, bq_ref, bv_ref,
                 k_ref, q_ref, v_ref):
    x = x_ref[...]
    k_ref[...] = jnp.dot(x, wk_ref[...], preferred_element_type=jnp.float32) + bk_ref[...]
    q_ref[...] = jnp.dot(x, wq_ref[...], preferred_element_type=jnp.float32) + bq_ref[...]
    v_ref[...] = jnp.dot(x, wv_ref[...], preferred_element_type=jnp.float32) + bv_ref[...]


# ---------------------------------------------------------------------------
# Kernel 2: gated aggregation, tiled over (target tiles, source chunks)
#   h[i] = sum_j A[i, j] * sigmoid(K[i] + Q[j]) * V[j]   (+ conv bias at finalize)
# The output block is resident across the source axis and used as the accumulator.
# ---------------------------------------------------------------------------
def _conv_agg_kernel(k_ref, q_ref, v_ref, adj_ref, bc_ref, h_ref):
    j = pl.program_id(1)

    @pl.when(j == 0)
    def _():
        h_ref[...] = jnp.zeros_like(h_ref)

    gate = jax.nn.sigmoid(k_ref[...][:, None, :] + q_ref[...][None, :, :])   # [TN, TS, D]
    msg = gate * v_ref[...][None, :, :]                                      # [TN, TS, D]
    adj = adj_ref[...].astype(jnp.float32)                                   # [TN, TS]
    h_ref[...] += jnp.sum(adj[:, :, None] * msg, axis=1)                     # [TN, D]

    @pl.when(j == pl.num_programs(1) - 1)
    def _():
        h_ref[...] += bc_ref[...]


# ---------------------------------------------------------------------------
# Kernel 3a: BatchNorm pass 1 -- masked per-channel sum / sum-of-squares.
# ---------------------------------------------------------------------------
def _bn_stats_kernel(h_ref, sum_ref, sumsq_ref, *, n_real, tile_rows):
    i = pl.program_id(0)

    @pl.when(i == 0)
    def _():
        sum_ref[...] = jnp.zeros_like(sum_ref)
        sumsq_ref[...] = jnp.zeros_like(sumsq_ref)

    h = h_ref[...]
    row = jax.lax.broadcasted_iota(jnp.int32, h.shape, 0) + i * tile_rows
    h = jnp.where(row < n_real, h, 0.0)          # ignore padded node rows
    sum_ref[...] += jnp.sum(h, axis=0, keepdims=True)
    sumsq_ref[...] += jnp.sum(h * h, axis=0, keepdims=True)


# ---------------------------------------------------------------------------
# Kernel 3b: BatchNorm pass 2 -- normalize + affine + ReLU, tile by tile.
# ---------------------------------------------------------------------------
def _bn_apply_kernel(h_ref, sum_ref, sumsq_ref, gamma_ref, beta_ref, o_ref, *, n_real):
    inv_n = 1.0 / n_real
    mean = sum_ref[...] * inv_n
    var = jnp.maximum(sumsq_ref[...] * inv_n - mean * mean, 0.0)   # biased var (PyTorch fwd)
    hn = (h_ref[...] - mean) * jax.lax.rsqrt(var + BN_EPS)
    o_ref[...] = jnp.maximum(hn * gamma_ref[...] + beta_ref[...], 0.0)


def gated_gcn_layer(feature, edge_index, params):
    n, din = feature.shape
    dout = params["wk"].shape[1]
    f32 = jnp.float32

    # --- tiling / padding decisions (lane-dense channel axis, 8/128-aligned node tiles) ---
    tile_n = min(128, _round_up(n, 8))
    n_pad = _round_up(n, tile_n)
    if n_pad <= 256:
        tile_src = n_pad                      # single source chunk (full-dim block)
    else:
        tile_src = 256
        n_pad = _round_up(n_pad, tile_src)    # divisible by both tile_n (=128) and tile_src
    dpad = _round_up(dout, 128)

    x = jnp.zeros((n_pad, din), f32).at[:n, :].set(feature.astype(f32))

    # Dense multiplicity adjacency A[target, source] (== the per-edge scatter-add), stored in bf16
    # (small integer counts are exact) to halve adjacency HBM traffic.
    src, tgt = edge_index[0], edge_index[1]
    adj = jnp.zeros((n_pad, n_pad), f32).at[tgt, src].add(1.0).astype(jnp.bfloat16)

    def pad_w(w):
        return jnp.zeros((din, dpad), f32).at[:, :dout].set(w.astype(f32))

    def pad_b(b):
        return jnp.zeros((1, dpad), f32).at[:, :dout].set(b.astype(f32))

    wk, wq, wv = pad_w(params["wk"]), pad_w(params["wq"]), pad_w(params["wv"])
    bk, bq, bv = pad_b(params["bk"]), pad_b(params["bq"]), pad_b(params["bv"])
    bc, gamma, beta = pad_b(params["bc"]), pad_b(params["gamma"]), pad_b(params["beta"])

    n_tiles = n_pad // tile_n
    n_src_chunks = n_pad // tile_src

    # ---- 1) hoisted projections: K, Q, V computed once for all nodes ----
    k, q, v = pl.pallas_call(
        _proj_kernel,
        out_shape=(jax.ShapeDtypeStruct((n_pad, dpad), f32),) * 3,
        grid=(n_tiles,),
        in_specs=[
            pl.BlockSpec((tile_n, din), lambda i: (i, 0)),
            pl.BlockSpec((din, dpad), lambda i: (0, 0)),
            pl.BlockSpec((din, dpad), lambda i: (0, 0)),
            pl.BlockSpec((din, dpad), lambda i: (0, 0)),
            pl.BlockSpec((1, dpad), lambda i: (0, 0)),
            pl.BlockSpec((1, dpad), lambda i: (0, 0)),
            pl.BlockSpec((1, dpad), lambda i: (0, 0)),
        ],
        out_specs=(pl.BlockSpec((tile_n, dpad), lambda i: (i, 0)),) * 3,
        compiler_params=pltpu.CompilerParams(dimension_semantics=("parallel",)),
    )(x, wk, wq, wv, bk, bq, bv)

    # ---- 2) gated aggregation, accumulated over source chunks ----
    h = pl.pallas_call(
        _conv_agg_kernel,
        out_shape=jax.ShapeDtypeStruct((n_pad, dpad), f32),
        grid=(n_tiles, n_src_chunks),
        in_specs=[
            pl.BlockSpec((tile_n, dpad), lambda i, j: (i, 0)),     # K (target rows)
            pl.BlockSpec((tile_src, dpad), lambda i, j: (j, 0)),   # Q (source chunk)
            pl.BlockSpec((tile_src, dpad), lambda i, j: (j, 0)),   # V (source chunk)
            pl.BlockSpec((tile_n, tile_src), lambda i, j: (i, j)), # adjacency tile (bf16)
            pl.BlockSpec((1, dpad), lambda i, j: (0, 0)),          # conv bias
        ],
        out_specs=pl.BlockSpec((tile_n, dpad), lambda i, j: (i, 0)),
        compiler_params=pltpu.CompilerParams(
            dimension_semantics=("parallel", "arbitrary"),
            vmem_limit_bytes=48 * 1024 * 1024,
        ),
    )(k, q, v, adj, bc)

    # ---- 3) BatchNorm1d (training-mode batch stats) + ReLU, two tiled passes ----
    s, ss = pl.pallas_call(
        functools.partial(_bn_stats_kernel, n_real=n, tile_rows=tile_n),
        out_shape=(jax.ShapeDtypeStruct((1, dpad), f32),) * 2,
        grid=(n_tiles,),
        in_specs=[pl.BlockSpec((tile_n, dpad), lambda i: (i, 0))],
        out_specs=(pl.BlockSpec((1, dpad), lambda i: (0, 0)),) * 2,
        compiler_params=pltpu.CompilerParams(dimension_semantics=("arbitrary",)),
    )(h)

    out = pl.pallas_call(
        functools.partial(_bn_apply_kernel, n_real=n),
        out_shape=jax.ShapeDtypeStruct((n_pad, dpad), f32),
        grid=(n_tiles,),
        in_specs=[
            pl.BlockSpec((tile_n, dpad), lambda i: (i, 0)),
            pl.BlockSpec((1, dpad), lambda i: (0, 0)),
            pl.BlockSpec((1, dpad), lambda i: (0, 0)),
            pl.BlockSpec((1, dpad), lambda i: (0, 0)),
            pl.BlockSpec((1, dpad), lambda i: (0, 0)),
        ],
        out_specs=pl.BlockSpec((tile_n, dpad), lambda i: (i, 0)),
        compiler_params=pltpu.CompilerParams(dimension_semantics=("parallel",)),
    )(h, s, ss, gamma, beta)

    # TODO(synk): nn.Dropout in train mode is stochastic; applied as identity here (eval mode).
    return out[:n, :dout]


def reference(feature, edge_index, params):
    """Pure-JAX reference with explicit per-edge scatter-add (PyG semantics)."""
    src, tgt = edge_index[0], edge_index[1]
    k = feature @ params["wk"] + params["bk"]
    q = feature @ params["wq"] + params["bq"]
    v = feature @ params["wv"] + params["bv"]
    msg = jax.nn.sigmoid(k[tgt] + q[src]) * v[src]
    h = jnp.zeros((feature.shape[0], k.shape[1]), feature.dtype).at[tgt].add(msg)
    h = h + params["bc"]
    mean = h.mean(0, keepdims=True)
    var = ((h - mean) ** 2).mean(0, keepdims=True)
    hn = (h - mean) / jnp.sqrt(var + BN_EPS) * params["gamma"] + params["beta"]
    return jnp.maximum(hn, 0.0)


if __name__ == "__main__":
    N, DIN, DOUT, E = 16, 16, 32, 48

    key = jax.random.PRNGKey(0)
    (k_feat, k_src, k_tgt, k_wk, k_wq, k_wv,
     k_bk, k_bq, k_bv, k_bc) = jax.random.split(key, 10)

    feature = jax.random.normal(k_feat, (N, DIN), jnp.float32)
    src = jax.random.randint(k_src, (E,), 0, N)
    tgt = jax.random.randint(k_tgt, (E,), 0, N)
    edge_index = jnp.stack([src, tgt], axis=0)          # [2, E], row0=src, row1=tgt

    s = 1.0 / np.sqrt(DIN)
    params = {
        "wk": jax.random.normal(k_wk, (DIN, DOUT), jnp.float32) * s,
        "wq": jax.random.normal(k_wq, (DIN, DOUT), jnp.float32) * s,
        "wv": jax.random.normal(k_wv, (DIN, DOUT), jnp.float32) * s,
        "bk": jax.random.normal(k_bk, (1, DOUT), jnp.float32) * 0.1,
        "bq": jax.random.normal(k_bq, (1, DOUT), jnp.float32) * 0.1,
        "bv": jax.random.normal(k_bv, (1, DOUT), jnp.float32) * 0.1,
        "bc": jax.random.normal(k_bc, (1, DOUT), jnp.float32) * 0.1,
        "gamma": jnp.ones((1, DOUT), jnp.float32),       # BatchNorm1d weight init
        "beta": jnp.zeros((1, DOUT), jnp.float32),       # BatchNorm1d bias init
    }

    out = jax.block_until_ready(gated_gcn_layer(feature, edge_index, params))
    ref = jax.block_until_ready(reference(feature, edge_index, params))

    np.testing.assert_allclose(np.asarray(out), np.asarray(ref), rtol=1e-4, atol=1e-4)
    print("KERNEL_OK")
</pallas_src>

<mosaic_0001>
module attributes {stable_mosaic.version = 11 : i64} {
  func.func @_proj_kernel(%arg0: i32, %arg1: memref<16x16xf32, #tpu.memory_space<vmem>>, %arg2: memref<16x128xf32, #tpu.memory_space<vmem>>, %arg3: memref<16x128xf32, #tpu.memory_space<vmem>>, %arg4: memref<16x128xf32, #tpu.memory_space<vmem>>, %arg5: memref<1x128xf32, #tpu.memory_space<vmem>>, %arg6: memref<1x128xf32, #tpu.memory_space<vmem>>, %arg7: memref<1x128xf32, #tpu.memory_space<vmem>>, %arg8: memref<16x128xf32, #tpu.memory_space<vmem>>, %arg9: memref<16x128xf32, #tpu.memory_space<vmem>>, %arg10: memref<16x128xf32, #tpu.memory_space<vmem>>) attributes {dimension_semantics = [#tpu.dimension_semantics<parallel>], iteration_bounds = array<i64: 1>, scalar_prefetch = 0 : i64, scratch_operands = 0 : i64, tpu.core_type = #tpu.core_type<tc>, window_params = [{transform_indices = @transform_0, window_bounds = array<i64: 16, 16>}, {pipeline_mode = #tpu.pipeline_mode<synchronous>, transform_indices = @transform_1, window_bounds = array<i64: 16, 128>}, {pipeline_mode = #tpu.pipeline_mode<synchronous>, transform_indices = @transform_2, window_bounds = array<i64: 16, 128>}, {pipeline_mode = #tpu.pipeline_mode<synchronous>, transform_indices = @transform_3, window_bounds = array<i64: 16, 128>}, {pipeline_mode = #tpu.pipeline_mode<synchronous>, transform_indices = @transform_4, window_bounds = array<i64: 1, 128>}, {pipeline_mode = #tpu.pipeline_mode<synchronous>, transform_indices = @transform_5, window_bounds = array<i64: 1, 128>}, {pipeline_mode = #tpu.pipeline_mode<synchronous>, transform_indices = @transform_6, window_bounds = array<i64: 1, 128>}, {transform_indices = @transform_7, window_bounds = array<i64: 16, 128>}, {transform_indices = @transform_8, window_bounds = array<i64: 16, 128>}, {transform_indices = @transform_9, window_bounds = array<i64: 16, 128>}]} {
    %c0 = arith.constant 0 : index
    %c0_0 = arith.constant 0 : index
    %0 = vector.load %arg1[%c0, %c0_0] : memref<16x16xf32, #tpu.memory_space<vmem>>, vector<16x16xf32>
    %c0_1 = arith.constant 0 : index
    %c0_2 = arith.constant 0 : index
    %1 = vector.load %arg2[%c0_1, %c0_2] : memref<16x128xf32, #tpu.memory_space<vmem>>, vector<16x128xf32>
    %cst = arith.constant dense<0.000000e+00> : vector<16x128xf32>
    %2 = tpu.matmul %0, %1, %cst {dimension_numbers = #tpu.dot_dimension_numbers<[1], [0], [0], [1], [0, 0, 1, 1], [], []>} : vector<16x16xf32>, vector<16x128xf32>, vector<16x128xf32> -> vector<16x128xf32>
    %c0_3 = arith.constant 0 : index
    %c0_4 = arith.constant 0 : index
    %3 = vector.load %arg5[%c0_3, %c0_4] : memref<1x128xf32, #tpu.memory_space<vmem>>, vector<1x128xf32>
    %4 = vector.broadcast %3 : vector<1x128xf32> to vector<16x128xf32>
    %5 = arith.addf %2, %4 : vector<16x128xf32>
    %c0_5 = arith.constant 0 : index
    %c0_6 = arith.constant 0 : index
    %6 = vector.load %arg8[%c0_5, %c0_6] : memref<16x128xf32, #tpu.memory_space<vmem>>, vector<16x128xf32>
    tpu.vector_store %arg8[%c0_5, %c0_6], %5 {strides = array<i32>} : memref<16x128xf32, #tpu.memory_space<vmem>>, vector<16x128xf32>,
    %c0_7 = arith.constant 0 : index
    %c0_8 = arith.constant 0 : index
    %7 = vector.load %arg3[%c0_7, %c0_8] : memref<16x128xf32, #tpu.memory_space<vmem>>, vector<16x128xf32>
    %cst_9 = arith.constant dense<0.000000e+00> : vector<16x128xf32>
    %8 = tpu.matmul %0, %7, %cst_9 {dimension_numbers = #tpu.dot_dimension_numbers<[1], [0], [0], [1], [0, 0, 1, 1], [], []>} : vector<16x16xf32>, vector<16x128xf32>, vector<16x128xf32> -> vector<16x128xf32>
    %c0_10 = arith.constant 0 : index
    %c0_11 = arith.constant 0 : index
    %9 = vector.load %arg6[%c0_10, %c0_11] : memref<1x128xf32, #tpu.memory_space<vmem>>, vector<1x128xf32>
    %10 = vector.broadcast %9 : vector<1x128xf32> to vector<16x128xf32>
    %11 = arith.addf %8, %10 : vector<16x128xf32>
    %c0_12 = arith.constant 0 : index
    %c0_13 = arith.constant 0 : index
    %12 = vector.load %arg9[%c0_12, %c0_13] : memref<16x128xf32, #tpu.memory_space<vmem>>, vector<16x128xf32>
    tpu.vector_store %arg9[%c0_12, %c0_13], %11 {strides = array<i32>} : memref<16x128xf32, #tpu.memory_space<vmem>>, vector<16x128xf32>,
    %c0_14 = arith.constant 0 : index
    %c0_15 = arith.constant 0 : index
    %13 = vector.load %arg4[%c0_14, %c0_15] : memref<16x128xf32, #tpu.memory_space<vmem>>, vector<16x128xf32>
    %cst_16 = arith.constant dense<0.000000e+00> : vector<16x128xf32>
    %14 = tpu.matmul %0, %13, %cst_16 {dimension_numbers = #tpu.dot_dimension_numbers<[1], [0], [0], [1], [0, 0, 1, 1], [], []>} : vector<16x16xf32>, vector<16x128xf32>, vector<16x128xf32> -> vector<16x128xf32>
    %c0_17 = arith.constant 0 : index
    %c0_18 = arith.constant 0 : index
    %15 = vector.load %arg7[%c0_17, %c0_18] : memref<1x128xf32, #tpu.memory_space<vmem>>, vector<1x128xf32>
    %16 = vector.broadcast %15 : vector<1x128xf32> to vector<16x128xf32>
    %17 = arith.addf %14, %16 : vector<16x128xf32>
    %c0_19 = arith.constant 0 : index
    %c0_20 = arith.constant 0 : index
    %18 = vector.load %arg10[%c0_19, %c0_20] : memref<16x128xf32, #tpu.memory_space<vmem>>, vector<16x128xf32>
    tpu.vector_store %arg10[%c0_19, %c0_20], %17 {strides = array<i32>} : memref<16x128xf32, #tpu.memory_space<vmem>>, vector<16x128xf32>,
    return
  }
  func.func @transform_0(%arg0: i32) -> (i32, i32) {
    %c0_i32 = arith.constant 0 : i32
    %c0_i32_0 = arith.constant 0 : i32
    return %arg0, %c0_i32 : i32, i32
  }
  func.func @transform_1(%arg0: i32) -> (i32, i32) {
    %c0_i32 = arith.constant 0 : i32
    %c0_i32_0 = arith.constant 0 : i32
    %c0_i32_1 = arith.constant 0 : i32
    return %c0_i32, %c0_i32_0 : i32, i32
  }
  func.func @transform_2(%arg0: i32) -> (i32, i32) {
    %c0_i32 = arith.constant 0 : i32
    %c0_i32_0 = arith.constant 0 : i32
    %c0_i32_1 = arith.constant 0 : i32
    return %c0_i32, %c0_i32_0 : i32, i32
  }
  func.func @transform_3(%arg0: i32) -> (i32, i32) {
    %c0_i32 = arith.constant 0 : i32
    %c0_i32_0 = arith.constant 0 : i32
    %c0_i32_1 = arith.constant 0 : i32
    return %c0_i32, %c0_i32_0 : i32, i32
  }
  func.func @transform_4(%arg0: i32) -> (i32, i32) {
    %c0_i32 = arith.constant 0 : i32
    %c0_i32_0 = arith.constant 0 : i32
    %c0_i32_1 = arith.constant 0 : i32
    return %c0_i32, %c0_i32_0 : i32, i32
  }
  func.func @transform_5(%arg0: i32) -> (i32, i32) {
    %c0_i32 = arith.constant 0 : i32
    %c0_i32_0 = arith.constant 0 : i32
    %c0_i32_1 = arith.constant 0 : i32
    return %c0_i32, %c0_i32_0 : i32, i32
  }
  func.func @transform_6(%arg0: i32) -> (i32, i32) {
    %c0_i32 = arith.constant 0 : i32
    %c0_i32_0 = arith.constant 0 : i32
    %c0_i32_1 = arith.constant 0 : i32
    return %c0_i32, %c0_i32_0 : i32, i32
  }
  func.func @transform_7(%arg0: i32) -> (i32, i32) {
    %c0_i32 = arith.constant 0 : i32
    %c0_i32_0 = arith.constant 0 : i32
    return %arg0, %c0_i32 : i32, i32
  }
  func.func @transform_8(%arg0: i32) -> (i32, i32) {
    %c0_i32 = arith.constant 0 : i32
    %c0_i32_0 = arith.constant 0 : i32
    return %arg0, %c0_i32 : i32, i32
  }
  func.func @transform_9(%arg0: i32) -> (i32, i32) {
    %c0_i32 = arith.constant 0 : i32
    %c0_i32_0 = arith.constant 0 : i32
    return %arg0, %c0_i32 : i32, i32
  }
}

</mosaic_0001>

<bundles_post_ra>
// kernel: tpu_custom_call.1
= control target key start
LH: loop header
LB: loop body
LE: loop exit
PB: predicated region body
PF: predicated region fallthrough
CT: control target
= control target key end

     0   :  { %15 = vsyncpa [#allocation3], 0  ;;  %s720_s0 = inlined_call_operand.hbm [shape: f32[16,16], index: 0, kind: input, shape index: {}]   ;;  %s721_s1 = inlined_call_operand.hbm [shape: f32[16,128], index: 1, kind: input, shape index: {}]   ;;  %s722_s2 = inlined_call_operand.hbm [shape: f32[16,128], index: 2, kind: input, shape index: {}]   ;;  %s723_s3 = inlined_call_operand.hbm [shape: f32[16,128], index: 3, kind: input, shape index: {}]   ;;  %s724_s4 = inlined_call_operand.vmem [shape: f32[1,128], index: 4, kind: input, shape index: {}]   ;;  %s725_s5 = inlined_call_operand.vmem [shape: f32[1,128], index: 5, kind: input, shape index: {}]   ;;  %s726_s6 = inlined_call_operand.vmem [shape: f32[1,128], index: 6, kind: input, shape index: {}]   ;;  %s727_s7 = inlined_call_operand.hbm [shape: f32[16,128], index: 7, kind: output, shape index: {0}]   ;;  %s728_s8 = inlined_call_operand.hbm [shape: f32[16,128], index: 8, kind: output, shape index: {1}]   ;;  %s729_s9 = inlined_call_operand.hbm [shape: f32[16,128], index: 9, kind: output, shape index: {2}]  }
   0x1   :  { %16 = vsyncpa [#allocation6], 0 }
   0x2   :  { %17 = vsyncpa [#allocation9], 0 }
   0x3   :  { %18 = vsyncpa [#allocation4], 0 }
   0x4   :  { %19 = vsyncpa [#allocation12], 0  ;;  %s604_s30 = smov [#allocation5]   ;;  %s605_s11 = smov [#allocation2]  }
   0x5   :  { %s37_s10 = sshll.u32 %s604_s30, 4  ;;  %s25_s12 = sshll.u32 %s605_s11, 4  ;;  %s38_s10 = int_to_ptr.vmem [resolvable:$true] %s37_s10  ;;  %s26_s12 = int_to_ptr.vmem [resolvable:$true] %s25_s12 }
   0x6   :  { %s462_s13 = scalar_lea.vmem %s38_s10, 256  ;;  %p467_p1 = scmp.lt.s32.totalorder %s38_s10, %s38_s10 }
   0x7   :  { %p463_p0 = scmp.ne.s32.totalorder %s38_s10, %s462_s13  ;;  %p468_p2 = scmp.lt.s32.totalorder %s462_s13, %s462_s13 }
   0x9   :  { %p469_p3 = por %p468_p2, %p467_p1 }
   0xb   :  { %p470_p4 = pnand %p469_p3, %p463_p0 }
   0xd   :  { %473 = shalt.err (!%p470_p4)
}
   0xe   :  { %s606_s14 = smov 128   ;;  %s607_s15 = smov 8  }
   0xf   :  { %43 = dma.hbm_to_vmem [thread:$0]  %s721_s1, 256, %s38_s10, [#allocation6], %s606_s14, %s606_s14, %s607_s15  }
  0x10   :  { %s482_s18 = scalar_lea.vmem %s26_s12, 256  ;;  %p487_p6 = scmp.lt.s32.totalorder %s26_s12, %s26_s12 }
  0x11   :  { %p483_p5 = scmp.ne.s32.totalorder %s26_s12, %s482_s18  ;;  %p488_p7 = scmp.lt.s32.totalorder %s482_s18, %s482_s18 }
  0x13   :  { %p489_p8 = por %p488_p7, %p487_p6 }
  0x15   :  { %p490_p9 = pnand %p489_p8, %p483_p5 }
  0x17   :  { %493 = shalt.err (!%p490_p9)
}
  0x18   :  { %31 = dma.hbm_to_vmem [thread:$0]  %s720_s0, 256, %s26_s12, [#allocation3], %s606_s14, %s606_s14, %s607_s15  }
  0x19   :  { %s608_s21 = smov [#allocation7]   ;;  %s609_s23 = smov [#allocation8]  }
  0x1a   :  { %s49_s22 = sshll.u32 %s608_s21, 4  ;;  %s61_s24 = sshll.u32 %s609_s23, 4  ;;  %s50_s22 = int_to_ptr.vmem [resolvable:$true] %s49_s22  ;;  %s62_s24 = int_to_ptr.vmem [resolvable:$true] %s61_s24 }
  0x1b   :  { %s502_s1 = scalar_lea.vmem %s50_s22, 256  ;;  %p507_p11 = scmp.lt.s32.totalorder %s50_s22, %s50_s22 }
  0x1c   :  { %p503_p10 = scmp.ne.s32.totalorder %s50_s22, %s502_s1  ;;  %p508_p12 = scmp.lt.s32.totalorder %s502_s1, %s502_s1 }
  0x1e   :  { %p509_p13 = por %p508_p12, %p507_p11 }
  0x20   :  { %p510_p0 = pnand %p509_p13, %p503_p10 }
  0x22   :  { %513 = shalt.err (!%p510_p0)
}
  0x23   :  { %55 = dma.hbm_to_vmem [thread:$0]  %s722_s2, 256, %s50_s22, [#allocation6], %s606_s14, %s606_s14, %s607_s15  }
  0x24   :  { %s522_s0 = scalar_lea.vmem %s62_s24, 256  ;;  %p527_p2 = scmp.lt.s32.totalorder %s62_s24, %s62_s24 }
  0x25   :  { %p523_p1 = scmp.ne.s32.totalorder %s62_s24, %s522_s0  ;;  %p528_p3 = scmp.lt.s32.totalorder %s522_s0, %s522_s0 }
  0x27   :  { %p529_p4 = por %p528_p3, %p527_p2 }
  0x29   :  { %p530_p5 = pnand %p529_p4, %p523_p1 }
  0x2b   :  { %533 = shalt.err (!%p530_p5)
}
  0x2c   :  { %67 = dma.hbm_to_vmem [thread:$0]  %s723_s3, 256, %s62_s24, [#allocation9], %s606_s14, %s606_s14, %s607_s15  }
  0x2d   :  { %594 = dma.done.wait [#allocation3], 256  }
  0x2e   :  { %595 = vsyncadd [#allocation3], 4294967040 }
  0x2f   :  { %596 = dma.done.wait [#allocation6], 512  }
  0x30   :  { %597 = vsyncadd [#allocation6], 4294966784 }
  0x31   :  { %598 = dma.done.wait [#allocation9], 256  }
  0x32   :  { %599 = vsyncadd [#allocation9], 4294967040  ;;  %vm97_vm0 = vcmask 130048   ;;  %v89_v0 = vld [vmem:[#allocation5 + $0x8] sm:$0xff]  ;;  %v88_v1 = vld [vmem:[#allocation5] sm:$0xff]  ;;  %s610_s10 = smov [#allocation10]  }
  0x33   :  { %v182_v2 = vld [vmem:[#allocation7 + $0x8] sm:$0xff]  ;;  %424 = vmatprep.subr.mxu0 %v89_v0  ;;  %v86_v3 = vld [vmem:[#allocation2] sm:$0xff]  ;;  %v268_v6 = vld [vmem:[#allocation8 + $0x8] sm:$0xff]  ;;  %s358_s11 = sshll.u32 %s610_s10, 4  ;;  %s611_s12 = smov [#allocation11]   ;;  %s359_s11 = int_to_ptr.vmem [resolvable:$true] %s358_s11 }
  0x34   :  { %431 = vmatprep.subr.mxu1 %v182_v2  ;;  %v181_v4 = vld [vmem:[#allocation7] sm:$0xff]  ;;  %425 = vmatpush3.msra.mxu0 %v89_v0  ;;  %v87_v5 = vld [vmem:[#allocation2 + $0x8] sm:$0xff]  ;;  %v267_v7 = vld [vmem:[#allocation8] sm:$0xff]  ;;  %s370_s13 = sshll.u32 %s611_s12, 4  ;;  %p539_p7 = scmp.lt.s32.totalorder %s359_s11, %s359_s11  ;;  %s371_s13 = int_to_ptr.vmem [resolvable:$true] %s370_s13 }
  0x35   :  { %428 = vmatprep.mubr.msk.f32.mxu0 %vm97_vm0, %v86_v3  ;;  %426 = vmatprep.subr.mxu0 %v88_v1  ;;  %v403_v8 = vld [vmem:[%s724_s4] ss:$0 sm:$0xff]  ;;  %s612_s4 = smov [#allocation13]  }
  0x36   :  { %432 = vmatpush3.msra.mxu1 %v182_v2  ;;  %427 = vmatpush3.msra.mxu0 %v88_v1  ;;  %v406_v10 = vld [vmem:[%s725_s5] ss:$0 sm:$0xff]  ;;  %s382_s18 = sshll.u32 %s612_s4, 4  ;;  %s534_s5 = scalar_lea.vmem %s359_s11, 256  ;;  %s383_s18 = int_to_ptr.vmem [resolvable:$true] %s382_s18 }
  0x37   :  { %433 = vmatprep.subr.mxu1 %v181_v4  ;;  %429 = vmatmul.mubr.msk.f32.vlgmr.msra.gmra.mxu0 %vm97_vm0, %v87_v5  ;;  %v409_v16 = vld [vmem:[%s726_s6] ss:$0 sm:$0xff]  ;;  %p535_p6 = scmp.ne.s32.totalorder %s359_s11, %s534_s5  ;;  %p540_p8 = scmp.lt.s32.totalorder %s534_s5, %s534_s5 }
  0x38   :  { %438 = vmatprep.subr.mxu0 %v268_v6  ;;  %434 = vmatpush3.msra.mxu1 %v181_v4 }
  0x39   :  { %435 = vmatprep.mubr.msk.f32.mxu1 %vm97_vm0, %v86_v3  ;;  %439 = vmatpush3.msra.mxu0 %v268_v6  ;;  %p541_p9 = por %p540_p8, %p539_p7 }
  0x3a   :  { %436 = vmatmul.mubr.msk.f32.vlgmr.msra.gmra.mxu1 %vm97_vm0, %v87_v5  ;;  %440 = vmatprep.subr.mxu0 %v267_v7 }
  0x3b   :  { %442 = vmatprep.mubr.msk.f32.mxu0 %vm97_vm0, %v86_v3  ;;  %441 = vmatpush3.msra.mxu0 %v267_v7  ;;  %p542_p10 = pnand %p541_p9, %p535_p6 }
  0x3c   :  { %443 = vmatmul.mubr.msk.f32.vlgmr.msra.gmra.mxu0 %vm97_vm0, %v87_v5 }
  0xf7   :  { %v430_v9 = vpop.f32.mrf.mxu0 }
  0xf8   :  { %v176_v11 = vadd.f32 %v430_v9, %v403_v8 }
  0xf9   :  { %v170_v12 = vpop.f32.mrf.mxu0 }
  0xfa   :  { %v437_v13 = vpop.f32.mrf.mxu1  ;;  %180 = vst [vmem:[#allocation10 + $0x8] sm:$0xff] %v176_v11  ;;  %v171_v14 = vadd.f32 %v403_v8, %v170_v12 }
  0xfb   :  { %v262_v15 = vadd.f32 %v437_v13, %v406_v10 }
  0xfc   :  { %v256_v17 = vpop.f32.mrf.mxu1  ;;  %179 = vst [vmem:[#allocation10] sm:$0xff] %v171_v14  ;;  %v444_v19 = vpop.f32.mrf.mxu0 }
  0xfd   :  { %266 = vst [vmem:[#allocation11 + $0x8] sm:$0xff] %v262_v15  ;;  %v257_v18 = vadd.f32 %v406_v10, %v256_v17  ;;  %v348_v20 = vadd.f32 %v444_v19, %v409_v16 }
  0xfe   :  { %545 = shalt.err (!%p542_p10)
}
  0xff   :  { %364 = dma.vmem_to_hbm [thread:$0]  %s359_s11, 256, %s727_s7, [#allocation4], %s606_s14, %s606_s14, %s607_s15   ;;  %265 = vst [vmem:[#allocation11] sm:$0xff] %v257_v18  ;;  %v342_v21 = vpop.f32.mrf.mxu0  ;;  %352 = vst [vmem:[#allocation13 + $0x8] sm:$0xff] %v348_v20 }
 0x100   :  { %v343_v22 = vadd.f32 %v409_v16, %v342_v21  ;;  %s554_s20 = scalar_lea.vmem %s371_s13, 256  ;;  %p559_p12 = scmp.lt.s32.totalorder %s371_s13, %s371_s13 }
 0x101   :  { %p555_p11 = scmp.ne.s32.totalorder %s371_s13, %s554_s20  ;;  %p560_p13 = scmp.lt.s32.totalorder %s554_s20, %s554_s20 }
 0x103   :  { %p561_p0 = por %p560_p13, %p559_p12 }
 0x105   :  { %p562_p1 = pnand %p561_p0, %p555_p11 }
 0x107   :  { %565 = shalt.err (!%p562_p1)
}
 0x108   :  { %376 = dma.vmem_to_hbm [thread:$0]  %s371_s13, 256, %s728_s8, [#allocation12], %s606_s14, %s606_s14, %s607_s15   ;;  %351 = vst [vmem:[#allocation13] sm:$0xff] %v343_v22 }
 0x109   :  { %s574_s7 = scalar_lea.vmem %s383_s18, 256  ;;  %p579_p3 = scmp.lt.s32.totalorder %s383_s18, %s383_s18 }
 0x10a   :  { %p575_p2 = scmp.ne.s32.totalorder %s383_s18, %s574_s7  ;;  %p580_p4 = scmp.lt.s32.totalorder %s574_s7, %s574_s7 }
 0x10c   :  { %p581_p5 = por %p580_p4, %p579_p3 }
 0x10e   :  { %p582_p6 = pnand %p581_p5, %p575_p2 }
 0x110   :  { %585 = shalt.err (!%p582_p6)
}
 0x111   :  { %388 = dma.vmem_to_hbm [thread:$0]  %s383_s18, 256, %s729_s9, [#allocation12], %s606_s14, %s606_s14, %s607_s15  }
 0x112   :  { %600 = dma.done.wait [#allocation4], 256  }
 0x113   :  { %601 = vsyncadd [#allocation4], 4294967040 }
 0x114   :  { %602 = dma.done.wait [#allocation12], 512  }
 0x115   :  { %603 = vsyncadd [#allocation12], 4294966784 }
 0x116   :  { %398 = vsyncpa [#allocation3], 1 }
 0x117   :  { %399 = vsyncpa [#allocation6], 1 }
 0x118   :  { %400 = vsyncpa [#allocation9], 1 }
 0x119   :  { %401 = vsyncpa [#allocation4], 1 }
 0x11a   :  { %402 = vsyncpa [#allocation12], 1 }

</bundles_post_ra>
